<compile_context>
chip_gen: v7x
topology: tpu7x:2x2x1
jax: 0.10.0
libtpu: 0.0.40
codegen_flags: <defaults>
</compile_context>

<pallas_src>
import functools

import jax
import jax.numpy as jnp
from jax.experimental import pallas as pl
from jax.experimental.pallas import tpu as pltpu

_LANE = 128      # lane width (last dim)
_SUBLANE = 8     # sublane width (second-to-last dim)


def _round_up(n, m):
    return ((n + m - 1) // m) * m


def _pad2d(a, rows, cols):
    return jnp.pad(a, ((0, rows - a.shape[0]), (0, cols - a.shape[1])))


def mlp_kernel(x_ref, w1_ref, b1_ref, w2_ref, b2_ref, w3_ref, b3_ref, o_ref):
    # Layer 1: bf16 MXU matmul, f32 accumulate; bias-add + ReLU epilogue in f32.
    h1 = jnp.dot(x_ref[...], w1_ref[...], preferred_element_type=jnp.float32)
    h1 = jnp.maximum(h1 + b1_ref[...], 0.0)

    # Layer 2.
    h2 = jnp.dot(h1.astype(w2_ref.dtype), w2_ref[...],
                 preferred_element_type=jnp.float32)
    h2 = jnp.maximum(h2 + b2_ref[...], 0.0)

    # Head (lane-dense 128-wide output; real 2 columns sliced in the wrapper).
    out = jnp.dot(h2.astype(w3_ref.dtype), w3_ref[...],
                  preferred_element_type=jnp.float32)
    o_ref[...] = (out + b3_ref[...]).astype(o_ref.dtype)


@functools.partial(jax.jit, static_argnames=("block_b",))
def mlp_forward(x, params, *, block_b=128):
    """x: [B, inp_dim] float32; params: dict (see init_params). Returns [B, out_dim] f32."""
    w1, b1, w2, b2, w3, b3 = (params["w1"], params["b1"], params["w2"],
                              params["b2"], params["w3"], params["b3"])
    B, d_in = x.shape
    hid = w1.shape[1]
    out_dim = w3.shape[1]

    # Lane-pad feature dims so every matmul K/N and the output store are 128-wide.
    hid_p = _round_up(hid, _LANE)
    out_p = _round_up(out_dim, _LANE)

    # Batch tile: largest multiple-of-8 tile <= block_b; pad B up to a multiple.
    tb = min(block_b, _round_up(B, _SUBLANE))
    b_p = _round_up(B, tb)

    bf16 = jnp.bfloat16
    x_p = jnp.pad(x, ((0, b_p - B), (0, 0))).astype(bf16)
    # Zero padding keeps padded hidden/output lanes exactly 0 through ReLU.
    w1_p = _pad2d(w1, d_in, hid_p).astype(bf16)
    w2_p = _pad2d(w2, hid_p, hid_p).astype(bf16)
    w3_p = _pad2d(w3, hid_p, out_p).astype(bf16)
    b1_p = _pad2d(b1, 1, hid_p).astype(jnp.float32)
    b2_p = _pad2d(b2, 1, hid_p).astype(jnp.float32)
    b3_p = _pad2d(b3, 1, out_p).astype(jnp.float32)

    grid = (b_p // tb,)

    # Weights/biases: same block every grid step -> loaded once, VMEM-resident.
    resident = lambda shape: pl.BlockSpec(shape, lambda i: (0, 0))

    flops = 2 * b_p * (d_in * hid_p + hid_p * hid_p + hid_p * out_p)
    bytes_accessed = (x_p.size * 2 + w1_p.size * 2 + w2_p.size * 2
                      + w3_p.size * 2
                      + (b1_p.size + b2_p.size + b3_p.size) * 4
                      + b_p * out_p * 4)

    out_padded = pl.pallas_call(
        mlp_kernel,
        out_shape=jax.ShapeDtypeStruct((b_p, out_p), jnp.float32),
        grid=grid,
        in_specs=[
            pl.BlockSpec((tb, d_in), lambda i: (i, 0)),   # x: tiled over batch
            resident((d_in, hid_p)),                      # W1
            resident((1, hid_p)),                         # b1
            resident((hid_p, hid_p)),                     # W2
            resident((1, hid_p)),                         # b2
            resident((hid_p, out_p)),                     # W3
            resident((1, out_p)),                         # b3
        ],
        out_specs=pl.BlockSpec((tb, out_p), lambda i: (i, 0)),
        compiler_params=pltpu.CompilerParams(
            dimension_semantics=("parallel",)),
        cost_estimate=pl.CostEstimate(flops=flops, transcendentals=0,
                                      bytes_accessed=bytes_accessed),
    )(x_p, w1_p, b1_p, w2_p, b2_p, w3_p, b3_p)

    return out_padded[:B, :out_dim]


def init_params(key, inp_dim, hid=32, out_dim=2):
    """Deterministic synthetic parameters (nn.Linear, stored as [in, out])."""
    ks = jax.random.split(key, 6)
    scale = 0.1
    return {
        "w1": scale * jax.random.normal(ks[0], (inp_dim, hid), jnp.float32),
        "b1": scale * jax.random.normal(ks[1], (1, hid), jnp.float32),
        "w2": scale * jax.random.normal(ks[2], (hid, hid), jnp.float32),
        "b2": scale * jax.random.normal(ks[3], (1, hid), jnp.float32),
        "w3": scale * jax.random.normal(ks[4], (hid, out_dim), jnp.float32),
        "b3": scale * jax.random.normal(ks[5], (1, out_dim), jnp.float32),
    }


def mlp_reference(x, params):
    h1 = jnp.maximum(x @ params["w1"] + params["b1"], 0.0)
    h2 = jnp.maximum(h1 @ params["w2"] + params["b2"], 0.0)
    return h2 @ params["w3"] + params["b3"]


if __name__ == "__main__":
    key = jax.random.PRNGKey(0)
    k_x, k_p = jax.random.split(key)

    B, inp_dim, hid, out_dim = 256, 16, 32, 2
    x = jax.random.normal(k_x, (B, inp_dim), jnp.float32)
    params = init_params(k_p, inp_dim, hid=hid, out_dim=out_dim)

    # Main run: 2 grid steps of 128 rows (parallel axis -> both TCs on v7x).
    out = jax.block_until_ready(mlp_forward(x, params))
    ref = mlp_reference(x, params)
    assert out.shape == (B, out_dim)
    # bf16 matmul inputs -> tolerance loosened vs. the pure-f32 reference.
    assert jnp.allclose(out, ref, atol=2e-2, rtol=2e-2), "mismatch vs reference"

    # Small-batch path (tile shrinks to 8 rows, single grid step).
    out_small = jax.block_until_ready(mlp_forward(x[:8], params))
    assert out_small.shape == (8, out_dim)
    assert jnp.allclose(out_small, ref[:8], atol=2e-2, rtol=2e-2), \
        "small-batch mismatch vs reference"

    print("KERNEL_OK")
</pallas_src>

<mosaic_0001>
module attributes {stable_mosaic.version = 11 : i64} {
  func.func @mlp_kernel(%arg0: i32, %arg1: memref<128x16xbf16, #tpu.memory_space<vmem>>, %arg2: memref<16x128xbf16, #tpu.memory_space<vmem>>, %arg3: memref<1x128xf32, #tpu.memory_space<vmem>>, %arg4: memref<128x128xbf16, #tpu.memory_space<vmem>>, %arg5: memref<1x128xf32, #tpu.memory_space<vmem>>, %arg6: memref<128x128xbf16, #tpu.memory_space<vmem>>, %arg7: memref<1x128xf32, #tpu.memory_space<vmem>>, %arg8: memref<128x128xf32, #tpu.memory_space<vmem>>) attributes {dimension_semantics = [#tpu.dimension_semantics<parallel>], iteration_bounds = array<i64: 2>, scalar_prefetch = 0 : i64, scratch_operands = 0 : i64, tpu.core_type = #tpu.core_type<tc>, window_params = [{transform_indices = @transform_0, window_bounds = array<i64: 128, 16>}, {pipeline_mode = #tpu.pipeline_mode<synchronous>, transform_indices = @transform_1, window_bounds = array<i64: 16, 128>}, {pipeline_mode = #tpu.pipeline_mode<synchronous>, transform_indices = @transform_2, window_bounds = array<i64: 1, 128>}, {pipeline_mode = #tpu.pipeline_mode<synchronous>, transform_indices = @transform_3, window_bounds = array<i64: 128, 128>}, {pipeline_mode = #tpu.pipeline_mode<synchronous>, transform_indices = @transform_4, window_bounds = array<i64: 1, 128>}, {pipeline_mode = #tpu.pipeline_mode<synchronous>, transform_indices = @transform_5, window_bounds = array<i64: 128, 128>}, {pipeline_mode = #tpu.pipeline_mode<synchronous>, transform_indices = @transform_6, window_bounds = array<i64: 1, 128>}, {transform_indices = @transform_7, window_bounds = array<i64: 128, 128>}]} {
    %c0 = arith.constant 0 : index
    %c0_0 = arith.constant 0 : index
    %0 = vector.load %arg1[%c0, %c0_0] : memref<128x16xbf16, #tpu.memory_space<vmem>>, vector<128x16xbf16>
    %c0_1 = arith.constant 0 : index
    %c0_2 = arith.constant 0 : index
    %1 = vector.load %arg2[%c0_1, %c0_2] : memref<16x128xbf16, #tpu.memory_space<vmem>>, vector<16x128xbf16>
    %cst = arith.constant dense<0.000000e+00> : vector<128x128xf32>
    %2 = tpu.matmul %0, %1, %cst {dimension_numbers = #tpu.dot_dimension_numbers<[1], [0], [0], [1], [0, 0, 1, 1], [], []>} : vector<128x16xbf16>, vector<16x128xbf16>, vector<128x128xf32> -> vector<128x128xf32>
    %c0_3 = arith.constant 0 : index
    %c0_4 = arith.constant 0 : index
    %3 = vector.load %arg3[%c0_3, %c0_4] : memref<1x128xf32, #tpu.memory_space<vmem>>, vector<1x128xf32>
    %4 = vector.broadcast %3 : vector<1x128xf32> to vector<128x128xf32>
    %5 = arith.addf %2, %4 : vector<128x128xf32>
    %cst_5 = arith.constant 0.000000e+00 : f32
    %6 = vector.broadcast %cst_5 : f32 to vector<128x128xf32>
    %7 = arith.maximumf %5, %6 : vector<128x128xf32>
    %8 = arith.truncf %7 : vector<128x128xf32> to vector<128x128xbf16>
    %c0_6 = arith.constant 0 : index
    %c0_7 = arith.constant 0 : index
    %9 = vector.load %arg4[%c0_6, %c0_7] : memref<128x128xbf16, #tpu.memory_space<vmem>>, vector<128x128xbf16>
    %cst_8 = arith.constant dense<0.000000e+00> : vector<128x128xf32>
    %10 = tpu.matmul %8, %9, %cst_8 {dimension_numbers = #tpu.dot_dimension_numbers<[1], [0], [0], [1], [0, 0, 1, 1], [], []>} : vector<128x128xbf16>, vector<128x128xbf16>, vector<128x128xf32> -> vector<128x128xf32>
    %c0_9 = arith.constant 0 : index
    %c0_10 = arith.constant 0 : index
    %11 = vector.load %arg5[%c0_9, %c0_10] : memref<1x128xf32, #tpu.memory_space<vmem>>, vector<1x128xf32>
    %12 = vector.broadcast %11 : vector<1x128xf32> to vector<128x128xf32>
    %13 = arith.addf %10, %12 : vector<128x128xf32>
    %cst_11 = arith.constant 0.000000e+00 : f32
    %14 = vector.broadcast %cst_11 : f32 to vector<128x128xf32>
    %15 = arith.maximumf %13, %14 : vector<128x128xf32>
    %16 = arith.truncf %15 : vector<128x128xf32> to vector<128x128xbf16>
    %c0_12 = arith.constant 0 : index
    %c0_13 = arith.constant 0 : index
    %17 = vector.load %arg6[%c0_12, %c0_13] : memref<128x128xbf16, #tpu.memory_space<vmem>>, vector<128x128xbf16>
    %cst_14 = arith.constant dense<0.000000e+00> : vector<128x128xf32>
    %18 = tpu.matmul %16, %17, %cst_14 {dimension_numbers = #tpu.dot_dimension_numbers<[1], [0], [0], [1], [0, 0, 1, 1], [], []>} : vector<128x128xbf16>, vector<128x128xbf16>, vector<128x128xf32> -> vector<128x128xf32>
    %c0_15 = arith.constant 0 : index
    %c0_16 = arith.constant 0 : index
    %19 = vector.load %arg7[%c0_15, %c0_16] : memref<1x128xf32, #tpu.memory_space<vmem>>, vector<1x128xf32>
    %20 = vector.broadcast %19 : vector<1x128xf32> to vector<128x128xf32>
    %21 = arith.addf %18, %20 : vector<128x128xf32>
    %c0_17 = arith.constant 0 : index
    %c0_18 = arith.constant 0 : index
    %22 = vector.load %arg8[%c0_17, %c0_18] : memref<128x128xf32, #tpu.memory_space<vmem>>, vector<128x128xf32>
    tpu.vector_store %arg8[%c0_17, %c0_18], %21 {strides = array<i32>} : memref<128x128xf32, #tpu.memory_space<vmem>>, vector<128x128xf32>,
    return
  }
  func.func @transform_0(%arg0: i32) -> (i32, i32) {
    %c0_i32 = arith.constant 0 : i32
    %c0_i32_0 = arith.constant 0 : i32
    return %arg0, %c0_i32 : i32, i32
  }
  func.func @transform_1(%arg0: i32) -> (i32, i32) {
    %c0_i32 = arith.constant 0 : i32
    %c0_i32_0 = arith.constant 0 : i32
    %c0_i32_1 = arith.constant 0 : i32
    return %c0_i32, %c0_i32_0 : i32, i32
  }
  func.func @transform_2(%arg0: i32) -> (i32, i32) {
    %c0_i32 = arith.constant 0 : i32
    %c0_i32_0 = arith.constant 0 : i32
    %c0_i32_1 = arith.constant 0 : i32
    return %c0_i32, %c0_i32_0 : i32, i32
  }
  func.func @transform_3(%arg0: i32) -> (i32, i32) {
    %c0_i32 = arith.constant 0 : i32
    %c0_i32_0 = arith.constant 0 : i32
    %c0_i32_1 = arith.constant 0 : i32
    return %c0_i32, %c0_i32_0 : i32, i32
  }
  func.func @transform_4(%arg0: i32) -> (i32, i32) {
    %c0_i32 = arith.constant 0 : i32
    %c0_i32_0 = arith.constant 0 : i32
    %c0_i32_1 = arith.constant 0 : i32
    return %c0_i32, %c0_i32_0 : i32, i32
  }
  func.func @transform_5(%arg0: i32) -> (i32, i32) {
    %c0_i32 = arith.constant 0 : i32
    %c0_i32_0 = arith.constant 0 : i32
    %c0_i32_1 = arith.constant 0 : i32
    return %c0_i32, %c0_i32_0 : i32, i32
  }
  func.func @transform_6(%arg0: i32) -> (i32, i32) {
    %c0_i32 = arith.constant 0 : i32
    %c0_i32_0 = arith.constant 0 : i32
    %c0_i32_1 = arith.constant 0 : i32
    return %c0_i32, %c0_i32_0 : i32, i32
  }
  func.func @transform_7(%arg0: i32) -> (i32, i32) {
    %c0_i32 = arith.constant 0 : i32
    %c0_i32_0 = arith.constant 0 : i32
    return %arg0, %c0_i32 : i32, i32
  }
}

</mosaic_0001>

<bundles_post_ra>
// kernel: mlp_forward.1
= control target key start
LH: loop header
LB: loop body
LE: loop exit
PB: predicated region body
PF: predicated region fallthrough
CT: control target
= control target key end

     0   :  { %s1183_s24 = smov 0   ;;  %s1290_s0 = inlined_call_operand.vmem [shape: bf16[256,16], index: 0, kind: input, shape index: {}]   ;;  %s1291_s1 = inlined_call_operand.vmem [shape: bf16[16,128], index: 1, kind: input, shape index: {}]   ;;  %s1292_s2 = inlined_call_operand.vmem [shape: f32[1,128], index: 2, kind: input, shape index: {}]   ;;  %s1293_s3 = inlined_call_operand.vmem [shape: bf16[128,128], index: 3, kind: input, shape index: {}]   ;;  %s1294_s4 = inlined_call_operand.vmem [shape: f32[1,128], index: 4, kind: input, shape index: {}]   ;;  %s1295_s5 = inlined_call_operand.vmem [shape: bf16[128,128], index: 5, kind: input, shape index: {}]   ;;  %s1296_s6 = inlined_call_operand.vmem [shape: f32[1,128], index: 6, kind: input, shape index: {}]   ;;  %s1297_s7 = inlined_call_operand.vmem [shape: f32[256,128], index: 7, kind: output, shape index: {}]  }
   0x1 LB: > { %s932_s25 = sadd.s32 4294967295, %s1141_s24   ;;  %p936_p0 = scmp.ge.s32.totalorder %s1141_s24, 1  ;;  %s1141_s24 = sphi %s1183_s24, %s17_s24  }
   0x2   : > { %p238_p1 = scmp.lt.s32.totalorder %s1141_s24, 3 }
   0x4   : > { %p239_p2 = pnand %p936_p0, %p238_p1 }
   0x5   : > { %v1110_v0 = vld [vmem:[%s1291_s1] sm:$0xff] (!%p239_p2)   ;;  %s937_s28 = sshll.u32 (!%p239_p2), %s932_s25, 4  ;;  %v1120_v2 = vld [vmem:[%s1293_s3 + $0x8] sm:$0xff] (!%p239_p2)   ;;  %vm354_vm0 = vcmask (!%p239_p2), 130048   ;;  %v1121_v3 = vld [vmem:[%s1293_s3 + $0x10] sm:$0xff] (!%p239_p2)  }
   0x6   : > { %242 = sbr.rel (%p239_p2) target bundleno = 704 (0x2c0), region = 48  ;;  %p271_p3 = scmp.lt.s32.totalorder (!%p239_p2), %s937_s28, 31  ;;  %1020 = vmatprep.subr.bf16.mxu0 (!%p239_p2), %v1110_v0  ;;  %v1119_v1 = vld [vmem:[%s1293_s3] sm:$0xff] (!%p239_p2)   ;;  %v1122_v7 = vld [vmem:[%s1293_s3 + $0x18] sm:$0xff] (!%p239_p2)   ;;  %v1124_v11 = vld [vmem:[%s1293_s3 + $0x28] sm:$0xff] (!%p239_p2)  }
   0x7   : > { %1021 = vmatpush3.bf16.msra.mxu0 (!%p239_p2), %v1110_v0  ;;  %1038 = vmatprep.subr.bf16.mxu1 (!%p239_p2), %v1119_v1  ;;  %v1123_v8 = vld [vmem:[%s1293_s3 + $0x20] sm:$0xff] (!%p239_p2)   ;;  %v1125_v15 = vld [vmem:[%s1293_s3 + $0x30] sm:$0xff] (!%p239_p2)   ;;  %v1126_v16 = vld [vmem:[%s1293_s3 + $0x38] sm:$0xff] (!%p239_p2)  }
   0x8   : > { %1039 = vmatpush3.bf16.msra.mxu1 (!%p239_p2), %v1119_v1  ;;  %v1127_v17 = vld [vmem:[%s1295_s5] sm:$0xff] (!%p239_p2)   ;;  %v1128_v18 = vld [vmem:[%s1295_s5 + $0x8] sm:$0xff] (!%p239_p2)   ;;  %v1129_v19 = vld [vmem:[%s1295_s5 + $0x10] sm:$0xff] (!%p239_p2)  }
   0x9   : > { %1040 = vmatprep.subr.bf16.mxu1 (!%p239_p2), %v1120_v2  ;;  %1070 = vmatprep.subr.bf16.mxu0 (!%p239_p2), %v1127_v17  ;;  %v1130_v20 = vld [vmem:[%s1295_s5 + $0x18] sm:$0xff] (!%p239_p2)   ;;  %v1131_v21 = vld [vmem:[%s1295_s5 + $0x20] sm:$0xff] (!%p239_p2)   ;;  %v1132_v22 = vld [vmem:[%s1295_s5 + $0x28] sm:$0xff] (!%p239_p2)  }
   0xa   : > { %v941_v23 = vld [vmem:[%s1292_s2] ss:$0 sm:$0xff] (!%p239_p2) }
   0xc   : > { %1041 = vmatpush3.bf16.msra.mxu1 (!%p239_p2), %v1120_v2 }
   0xd   : > { %s1299_s28 = smov (!%p271_p3, %s937_s28), 31  ;;  %1042 = vmatprep.subr.bf16.mxu1 %v1121_v3 }
   0xe   : > { %s938_s10 = sshll.u32 %s1299_s28, 2  ;;  %s940_s26 = sshll.u32 %s1299_s28, 3 }
   0xf   : > { %s274_s13 = scalar_lea.vmem %s1290_s0, %s938_s10  ;;  %s1269_s9 = scalar_lea.vmem %s1297_s7, %s940_s26 }
  0x10   : > { %v1111_v4 = vld [vmem:[%s274_s13] sm:$0xff]   ;;  %v1112_v5 = vld [vmem:[%s274_s13 + $0x8] sm:$0xff]   ;;  %v1113_v6 = vld [vmem:[%s274_s13 + $0x10] sm:$0xff]   ;;  %1043 = vmatpush3.bf16.msra.mxu1 %v1121_v3 }
  0x11   : > { %1022 = vmatprep.mubr.msk.bf16.mxu0 %vm354_vm0, %v1111_v4  ;;  %v1114_v9 = vld [vmem:[%s274_s13 + $0x18] sm:$0xff]   ;;  %1044 = vmatprep.subr.bf16.mxu1 %v1122_v7  ;;  %v1115_v10 = vld [vmem:[%s274_s13 + $0x20] sm:$0xff]   ;;  %v1116_v12 = vld [vmem:[%s274_s13 + $0x28] sm:$0xff]  }
  0x12   : > { %1023 = vmatmul.mubr.msk.bf16.vlgmr.msra.gmra.mrb[0].mxu0 %vm354_vm0, %v1112_v5  ;;  %v1117_v13 = vld [vmem:[%s274_s13 + $0x30] sm:$0xff]   ;;  %v1118_v14 = vld [vmem:[%s274_s13 + $0x38] sm:$0xff]  }
  0x13   : > { %1026 = vmatprep.mubr.msk.bf16.mxu0 %vm354_vm0, %v1113_v6  ;;  %1071 = vmatpush3.bf16.msra.mxu0 %v1127_v17  ;;  %v1134_v17 = vld [vmem:[%s1295_s5 + $0x38] sm:$0xff]  }
  0x14   : > { %1045 = vmatpush3.bf16.msra.mxu1 %v1122_v7  ;;  %1072 = vmatprep.subr.bf16.mxu0 %v1128_v18 }
  0x15   : > { %1046 = vmatprep.subr.bf16.mxu1 %v1123_v8 }
  0x17   : > { %1073 = vmatpush3.bf16.msra.mxu0 %v1128_v18  ;;  %v959_v18 = vld [vmem:[%s1294_s4] ss:$0 sm:$0xff] }
  0x18   : > { %1047 = vmatpush3.bf16.msra.mxu1 %v1123_v8  ;;  %1074 = vmatprep.subr.bf16.mxu0 %v1129_v19 }
  0x19   : > { %1048 = vmatprep.subr.bf16.mxu1 %v1124_v11 }
  0x1a   : > { %1027 = vmatmul.mubr.msk.bf16.gmra.mrb[4].mxu0 %vm354_vm0, %v1114_v9 }
  0x1b   : > { %1030 = vmatprep.mubr.msk.bf16.mxu0 %vm354_vm0, %v1115_v10  ;;  %1075 = vmatpush3.bf16.msra.mxu0 %v1129_v19 }
  0x1c   : > { %1049 = vmatpush3.bf16.msra.mxu1 %v1124_v11  ;;  %1076 = vmatprep.subr.bf16.mxu0 %v1130_v20 }
  0x1d   : > { %1050 = vmatprep.subr.bf16.mxu1 %v1125_v15 }
  0x1f   : > { %1077 = vmatpush3.bf16.msra.mxu0 %v1130_v20 }
  0x20   : > { %1051 = vmatpush3.bf16.msra.mxu1 %v1125_v15  ;;  %1078 = vmatprep.subr.bf16.mxu0 %v1131_v21 }
  0x21   : > { %1052 = vmatprep.subr.bf16.mxu1 %v1126_v16 }
  0x22   : > { %1031 = vmatmul.mubr.msk.bf16.gmra.mrb[8].mxu0 %vm354_vm0, %v1116_v12 }
  0x23   : > { %1034 = vmatprep.mubr.msk.bf16.mxu0 %vm354_vm0, %v1117_v13  ;;  %1079 = vmatpush3.bf16.msra.mxu0 %v1131_v21 }
  0x24   : > { %1053 = vmatpush3.bf16.msra.mxu1 %v1126_v16  ;;  %1080 = vmatprep.subr.bf16.mxu0 %v1132_v22  ;;  %v1133_v16 = vld [vmem:[%s1295_s5 + $0x30] sm:$0xff]  }
  0x27   : > { %1081 = vmatpush3.bf16.msra.mxu0 %v1132_v22 }
  0x28   : > { %1082 = vmatprep.subr.bf16.mxu0 %v1133_v16 }
  0x2a   : > { %1035 = vmatmul.mubr.msk.bf16.gmra.mrb[12].mxu0 %vm354_vm0, %v1118_v14 }
  0x2b   : > { %1083 = vmatpush3.bf16.msra.mxu0 %v1133_v16 }
  0x2c   : > { %1084 = vmatprep.subr.bf16.mxu0 %v1134_v17 }
  0x2f   : > { %1085 = vmatpush3.bf16.msra.mxu0 %v1134_v17 }
  0xe5   : > { %v1024_v24 = vpop.f32.mrb[0].mxu0 }
  0xe6   : > { %v422_v25 = vadd.f32 %v1024_v24, %v941_v23  ;;  %v413_v26 = vpop.f32.mrb[1].mxu0 }
  0xe7   : > { %v414_v27 = vadd.f32 %v941_v23, %v413_v26  ;;  %v1025_v28 = vpop.f32.mrb[2].mxu0 }
  0xe8   : > { %v425_v29 = vadd.f32 %v1025_v28, %v941_v23  ;;  %v416_v30 = vpop.f32.mrb[3].mxu0  ;;  %v478_v32 = vmax.f32 %v422_v25, 0.0 }
  0xe9   : > { %v417_v31 = vadd.f32 %v941_v23, %v416_v30  ;;  %v476_v34 = vmax.f32 %v414_v27, 0.0 }
  0xea   : > { %v479_v33 = vmax.f32 %v425_v29, 0.0 }
  0xeb   : > { %v477_v35 = vmax.f32 %v417_v31, 0.0 }
  0xec   : > { %v493_v36 = vpack.c.bf16 %v479_v33, %v478_v32 }
  0xed   : > { %v1028_v37 = vpop.f32.mrb[4].mxu0  ;;  %v492_v38 = vpack.c.bf16 %v477_v35, %v476_v34 }
  0xee   : > { %v438_v39 = vadd.f32 %v1028_v37, %v941_v23  ;;  %v429_v40 = vpop.f32.mrb[5].mxu0 }
  0xef   : > { %v430_v41 = vadd.f32 %v941_v23, %v429_v40  ;;  %v1029_v42 = vpop.f32.mrb[6].mxu0  ;;  %1054 = vmatprep.mubr.bf16.mxu1 %v492_v38 }
  0xf0   : > { %v441_v43 = vadd.f32 %v1029_v42, %v941_v23  ;;  %v432_v44 = vpop.f32.mrb[7].mxu0  ;;  %1055 = vmatmul.mubr.bf16.vlgmr.msra.gmra.mrb[0].mxu1 %v493_v36  ;;  %v482_v46 = vmax.f32 %v438_v39, 0.0 }
  0xf1   : > { %v433_v45 = vadd.f32 %v941_v23, %v432_v44  ;;  %v480_v48 = vmax.f32 %v430_v41, 0.0 }
  0xf2   : > { %v483_v47 = vmax.f32 %v441_v43, 0.0 }
  0xf3   : > { %v481_v49 = vmax.f32 %v433_v45, 0.0 }
  0xf4   : > { %v495_v50 = vpack.c.bf16 %v483_v47, %v482_v46 }
  0xf5   : > { %v494_v51 = vpack.c.bf16 %v481_v49, %v480_v48  ;;  %v1032_v52 = vpop.f32.mrb[8].mxu0 }
  0xf6   : > { %v454_v53 = vadd.f32 %v1032_v52, %v941_v23  ;;  %v445_v54 = vpop.f32.mrb[9].mxu0 }
  0xf7   : > { %v446_v55 = vadd.f32 %v941_v23, %v445_v54  ;;  %v1033_v56 = vpop.f32.mrb[10].mxu0  ;;  %1058 = vmatprep.mubr.bf16.mxu1 %v494_v51 }
  0xf8   : > { %v457_v57 = vadd.f32 %v1033_v56, %v941_v23  ;;  %v448_v58 = vpop.f32.mrb[11].mxu0  ;;  %1059 = vmatmul.mubr.bf16.gmra.mrb[4].mxu1 %v495_v50  ;;  %v486_v60 = vmax.f32 %v454_v53, 0.0 }
  0xf9   : > { %v449_v59 = vadd.f32 %v941_v23, %v448_v58  ;;  %v484_v62 = vmax.f32 %v446_v55, 0.0 }
  0xfa   : > { %v487_v61 = vmax.f32 %v457_v57, 0.0 }
  0xfb   : > { %v485_v63 = vmax.f32 %v449_v59, 0.0 }
  0xfc   : > { %v497_v0 = vpack.c.bf16 %v487_v61, %v486_v60 }
  0xfd   : > { %v496_v1 = vpack.c.bf16 %v485_v63, %v484_v62  ;;  %v1036_v2 = vpop.f32.mrb[12].mxu0 }
  0xfe   : > { %v470_v3 = vadd.f32 %v1036_v2, %v941_v23  ;;  %v461_v4 = vpop.f32.mrb[13].mxu0 }
  0xff   : > { %v462_v5 = vadd.f32 %v941_v23, %v461_v4  ;;  %v1037_v6 = vpop.f32.mrb[14].mxu0  ;;  %1062 = vmatprep.mubr.bf16.mxu1 %v496_v1 }
 0x100   : > { %v473_v7 = vadd.f32 %v1037_v6, %v941_v23  ;;  %v464_v8 = vpop.f32.mrb[15].mxu0  ;;  %1063 = vmatmul.mubr.bf16.gmra.mrb[8].mxu1 %v497_v0  ;;  %v490_v10 = vmax.f32 %v470_v3, 0.0 }
 0x101   : > { %v465_v9 = vadd.f32 %v941_v23, %v464_v8  ;;  %v488_v12 = vmax.f32 %v462_v5, 0.0 }
 0x102   : > { %v491_v11 = vmax.f32 %v473_v7, 0.0 }
 0x103   : > { %v489_v13 = vmax.f32 %v465_v9, 0.0 }
 0x104   : > { %v499_v14 = vpack.c.bf16 %v491_v11, %v490_v10  ;;  %v968_v11 = vld [vmem:[%s1296_s6] ss:$0 sm:$0xff] }
 0x105   : > { %v498_v15 = vpack.c.bf16 %v489_v13, %v488_v12 }
 0x107   : > { %1066 = vmatprep.mubr.bf16.mxu1 %v498_v15 }
 0x108   : > { %1067 = vmatmul.mubr.bf16.gmra.mrb[12].mxu1 %v499_v14 }
 0x1c3   : > { %v1056_v19 = vpop.f32.mrb[0].mxu1 }
 0x1c4   : > { %v614_v20 = vadd.f32 %v1056_v19, %v959_v18  ;;  %v605_v21 = vpop.f32.mrb[1].mxu1 }
 0x1c5   : > { %v606_v22 = vadd.f32 %v959_v18, %v605_v21  ;;  %v1057_v23 = vpop.f32.mrb[2].mxu1 }
 0x1c6   : > { %v617_v24 = vadd.f32 %v1057_v23, %v959_v18  ;;  %v608_v25 = vpop.f32.mrb[3].mxu1  ;;  %v670_v27 = vmax.f32 %v614_v20, 0.0 }
 0x1c7   : > { %v609_v26 = vadd.f32 %v959_v18, %v608_v25  ;;  %v668_v29 = vmax.f32 %v606_v22, 0.0 }
 0x1c8   : > { %v671_v28 = vmax.f32 %v617_v24, 0.0 }
 0x1c9   : > { %v669_v30 = vmax.f32 %v609_v26, 0.0 }
 0x1ca   : > { %v685_v31 = vpack.c.bf16 %v671_v28, %v670_v27 }
 0x1cb   : > { %v684_v32 = vpack.c.bf16 %v669_v30, %v668_v29  ;;  %v1060_v33 = vpop.f32.mrb[4].mxu1 }
 0x1cc   : > { %v630_v34 = vadd.f32 %v1060_v33, %v959_v18  ;;  %v621_v35 = vpop.f32.mrb[5].mxu1 }
 0x1cd   : > { %v622_v36 = vadd.f32 %v959_v18, %v621_v35  ;;  %v1061_v37 = vpop.f32.mrb[6].mxu1  ;;  %1086 = vmatprep.mubr.bf16.mxu0 %v684_v32 }
 0x1ce   : > { %v633_v38 = vadd.f32 %v1061_v37, %v959_v18  ;;  %v624_v39 = vpop.f32.mrb[7].mxu1  ;;  %1087 = vmatmul.mubr.bf16.vlgmr.msra.gmra.mrb[16].mxu0 %v685_v31  ;;  %v674_v41 = vmax.f32 %v630_v34, 0.0 }
 0x1cf   : > { %v625_v40 = vadd.f32 %v959_v18, %v624_v39  ;;  %v672_v43 = vmax.f32 %v622_v36, 0.0 }
 0x1d0   : > { %v675_v42 = vmax.f32 %v633_v38, 0.0 }
 0x1d1   : > { %v673_v44 = vmax.f32 %v625_v40, 0.0 }
 0x1d2   : > { %v687_v45 = vpack.c.bf16 %v675_v42, %v674_v41 }
 0x1d3   : > { %v686_v46 = vpack.c.bf16 %v673_v44, %v672_v43  ;;  %v1064_v47 = vpop.f32.mrb[8].mxu1 }
 0x1d4   : > { %v646_v48 = vadd.f32 %v1064_v47, %v959_v18  ;;  %v637_v49 = vpop.f32.mrb[9].mxu1 }
 0x1d5   : > { %v638_v50 = vadd.f32 %v959_v18, %v637_v49  ;;  %v1065_v51 = vpop.f32.mrb[10].mxu1  ;;  %1090 = vmatprep.mubr.bf16.mxu0 %v686_v46 }
 0x1d6   : > { %v649_v52 = vadd.f32 %v1065_v51, %v959_v18  ;;  %v640_v53 = vpop.f32.mrb[11].mxu1  ;;  %1091 = vmatmul.mubr.bf16.gmra.mrb[20].mxu0 %v687_v45  ;;  %v678_v55 = vmax.f32 %v646_v48, 0.0 }
 0x1d7   : > { %v641_v54 = vadd.f32 %v959_v18, %v640_v53  ;;  %v676_v57 = vmax.f32 %v638_v50, 0.0 }
 0x1d8   : > { %v679_v56 = vmax.f32 %v649_v52, 0.0 }
 0x1d9   : > { %v677_v58 = vmax.f32 %v641_v54, 0.0 }
 0x1da   : > { %v689_v59 = vpack.c.bf16 %v679_v56, %v678_v55 }
 0x1db   : > { %v688_v60 = vpack.c.bf16 %v677_v58, %v676_v57  ;;  %v1068_v61 = vpop.f32.mrb[12].mxu1 }
 0x1dc   : > { %v662_v62 = vadd.f32 %v1068_v61, %v959_v18  ;;  %v653_v63 = vpop.f32.mrb[13].mxu1 }
 0x1dd   : > { %v654_v0 = vadd.f32 %v959_v18, %v653_v63  ;;  %v1069_v1 = vpop.f32.mrb[14].mxu1  ;;  %1094 = vmatprep.mubr.bf16.mxu0 %v688_v60 }
 0x1de   : > { %v665_v2 = vadd.f32 %v1069_v1, %v959_v18  ;;  %v656_v3 = vpop.f32.mrb[15].mxu1  ;;  %1095 = vmatmul.mubr.bf16.gmra.mrb[24].mxu0 %v689_v59  ;;  %v682_v5 = vmax.f32 %v662_v62, 0.0 }
 0x1df   : > { %v657_v4 = vadd.f32 %v959_v18, %v656_v3  ;;  %v680_v7 = vmax.f32 %v654_v0, 0.0 }
 0x1e0   : > { %v683_v6 = vmax.f32 %v665_v2, 0.0 }
 0x1e1   : > { %v681_v8 = vmax.f32 %v657_v4, 0.0 }
 0x1e2   : > { %v691_v9 = vpack.c.bf16 %v683_v6, %v682_v5 }
 0x1e3   : > { %v690_v10 = vpack.c.bf16 %v681_v8, %v680_v7 }
 0x1e5   : > { %1098 = vmatprep.mubr.bf16.mxu0 %v690_v10 }
 0x1e6   : > { %1099 = vmatmul.mubr.bf16.gmra.mrb[28].mxu0 %v691_v9 }
 0x2a1   : > { %v1088_v12 = vpop.f32.mrb[16].mxu0 }
 0x2a2   : > { %v806_v13 = vadd.f32 %v1088_v12, %v968_v11  ;;  %v797_v14 = vpop.f32.mrb[17].mxu0 }
 0x2a3   : > { %v798_v15 = vadd.f32 %v968_v11, %v797_v14  ;;  %v1089_v16 = vpop.f32.mrb[18].mxu0 }
 0x2a4   : > { %862 = vst [vmem:[%s1269_s9 + $0x10] sm:$0xff] %v806_v13  ;;  %v809_v17 = vadd.f32 %v1089_v16, %v968_v11  ;;  %v800_v18 = vpop.f32.mrb[19].mxu0 }
 0x2a5   : > { %860 = vst [vmem:[%s1269_s9] sm:$0xff] %v798_v15  ;;  %v801_v19 = vadd.f32 %v968_v11, %v800_v18 }
 0x2a6   : > { %863 = vst [vmem:[%s1269_s9 + $0x18] sm:$0xff] %v809_v17 }
 0x2a7   : > { %861 = vst [vmem:[%s1269_s9 + $0x8] sm:$0xff] %v801_v19 }
 0x2a9   : > { %v1092_v20 = vpop.f32.mrb[20].mxu0 }
 0x2aa   : > { %v822_v21 = vadd.f32 %v1092_v20, %v968_v11  ;;  %v813_v22 = vpop.f32.mrb[21].mxu0 }
 0x2ab   : > { %v814_v23 = vadd.f32 %v968_v11, %v813_v22  ;;  %v1093_v24 = vpop.f32.mrb[22].mxu0 }
 0x2ac   : > { %866 = vst [vmem:[%s1269_s9 + $0x30] sm:$0xff] %v822_v21  ;;  %v825_v25 = vadd.f32 %v1093_v24, %v968_v11  ;;  %v816_v26 = vpop.f32.mrb[23].mxu0 }
 0x2ad   : > { %864 = vst [vmem:[%s1269_s9 + $0x20] sm:$0xff] %v814_v23  ;;  %v817_v27 = vadd.f32 %v968_v11, %v816_v26 }
 0x2ae   : > { %867 = vst [vmem:[%s1269_s9 + $0x38] sm:$0xff] %v825_v25 }
 0x2af   : > { %865 = vst [vmem:[%s1269_s9 + $0x28] sm:$0xff] %v817_v27 }
 0x2b1   : > { %v1096_v28 = vpop.f32.mrb[24].mxu0 }
 0x2b2   : > { %v838_v29 = vadd.f32 %v1096_v28, %v968_v11  ;;  %v829_v30 = vpop.f32.mrb[25].mxu0 }
 0x2b3   : > { %v830_v31 = vadd.f32 %v968_v11, %v829_v30  ;;  %v1097_v32 = vpop.f32.mrb[26].mxu0 }
 0x2b4   : > { %870 = vst [vmem:[%s1269_s9 + $0x50] sm:$0xff] %v838_v29  ;;  %v841_v33 = vadd.f32 %v1097_v32, %v968_v11  ;;  %v832_v34 = vpop.f32.mrb[27].mxu0 }
 0x2b5   : > { %868 = vst [vmem:[%s1269_s9 + $0x40] sm:$0xff] %v830_v31  ;;  %v833_v35 = vadd.f32 %v968_v11, %v832_v34 }
 0x2b6   : > { %871 = vst [vmem:[%s1269_s9 + $0x58] sm:$0xff] %v841_v33 }
 0x2b7   : > { %869 = vst [vmem:[%s1269_s9 + $0x48] sm:$0xff] %v833_v35 }
 0x2b9   : > { %v1100_v36 = vpop.f32.mrb[28].mxu0 }
 0x2ba   : > { %v854_v37 = vadd.f32 %v1100_v36, %v968_v11  ;;  %v845_v38 = vpop.f32.mrb[29].mxu0 }
 0x2bb   : > { %v846_v39 = vadd.f32 %v968_v11, %v845_v38  ;;  %v1101_v40 = vpop.f32.mrb[30].mxu0 }
 0x2bc   : > { %874 = vst [vmem:[%s1269_s9 + $0x70] sm:$0xff] %v854_v37  ;;  %v857_v41 = vadd.f32 %v1101_v40, %v968_v11  ;;  %v848_v42 = vpop.f32.mrb[31].mxu0 }
 0x2bd   : > { %872 = vst [vmem:[%s1269_s9 + $0x60] sm:$0xff] %v846_v39  ;;  %v849_v43 = vadd.f32 %v968_v11, %v848_v42 }
 0x2be   : > { %875 = vst [vmem:[%s1269_s9 + $0x78] sm:$0xff] %v857_v41 }
 0x2bf   : > { %873 = vst [vmem:[%s1269_s9 + $0x68] sm:$0xff] %v849_v43 }
 0x2c0 PF: > { %s17_s24 = sadd.s32 1, %s1141_s24  }
 0x2c1   : > { %p14_p4 = scmp.ge.s32.totalorder %s17_s24, 4  }
 0x2c3   :  { %16 = sbr.rel (!%p14_p4) target bundleno = 1 (0x1), region = 78 }

</bundles_post_ra>
